<compile_context>
chip_gen: v6e
topology: v6e:2x2x1
jax: 0.10.0
libtpu: 0.0.40
codegen_flags: <defaults>
</compile_context>

<pallas_src>
import math

import jax
import jax.numpy as jnp
from jax import lax
from jax.experimental import pallas as pl
from jax.experimental.pallas import tpu as pltpu


# ----------------------------------------------------------------------------
# Pallas kernels: one fused kernel per conv stage (both octave outputs).
# ----------------------------------------------------------------------------
def _stage_kernel(ah_ref, wh_ref, bnh_ref, al_ref, wl_ref, bnl_ref,
                  oh_ref, ol_ref):
    """high: relu((wh @ ah) * scale_h + shift_h)   low: relu((wl @ al) * scale_l + shift_l)."""
    yh = jnp.dot(wh_ref[...], ah_ref[...], preferred_element_type=jnp.float32)
    bnh = bnh_ref[...]
    oh_ref[...] = jnp.maximum(yh * bnh[:, 0:1] + bnh[:, 1:2], 0.0).astype(oh_ref.dtype)

    yl = jnp.dot(wl_ref[...], al_ref[...], preferred_element_type=jnp.float32)
    bnl = bnl_ref[...]
    ol_ref[...] = jnp.maximum(yl * bnl[:, 0:1] + bnl[:, 1:2], 0.0).astype(ol_ref.dtype)


def _stage_res_kernel(ah_ref, wh_ref, bnh_ref, rh_ref,
                      al_ref, wl_ref, bnl_ref, rl_ref,
                      oh_ref, ol_ref):
    """Final stage: matmul, BN affine, residual add, ReLU."""
    yh = jnp.dot(wh_ref[...], ah_ref[...], preferred_element_type=jnp.float32)
    bnh = bnh_ref[...]
    oh_ref[...] = jnp.maximum(yh * bnh[:, 0:1] + bnh[:, 1:2] + rh_ref[...],
                              0.0).astype(oh_ref.dtype)

    yl = jnp.dot(wl_ref[...], al_ref[...], preferred_element_type=jnp.float32)
    bnl = bnl_ref[...]
    ol_ref[...] = jnp.maximum(yl * bnl[:, 0:1] + bnl[:, 1:2] + rl_ref[...],
                              0.0).astype(ol_ref.dtype)


def _vmem():
    return pl.BlockSpec(memory_space=pltpu.MemorySpace.VMEM)


def octave_stage(ah, wh, bnh, al, wl, bnl, out_dtype=jnp.float32):
    co_h, co_l = wh.shape[0], wl.shape[0]
    p_hi, p_lo = ah.shape[1], al.shape[1]
    return pl.pallas_call(
        _stage_kernel,
        out_shape=(jax.ShapeDtypeStruct((co_h, p_hi), out_dtype),
                   jax.ShapeDtypeStruct((co_l, p_lo), out_dtype)),
        in_specs=[_vmem()] * 6,
        out_specs=(_vmem(), _vmem()),
    )(ah, wh, bnh, al, wl, bnl)


def octave_stage_residual(ah, wh, bnh, rh, al, wl, bnl, rl, out_dtype=jnp.float32):
    co_h, co_l = wh.shape[0], wl.shape[0]
    p_hi, p_lo = ah.shape[1], al.shape[1]
    return pl.pallas_call(
        _stage_res_kernel,
        out_shape=(jax.ShapeDtypeStruct((co_h, p_hi), out_dtype),
                   jax.ShapeDtypeStruct((co_l, p_lo), out_dtype)),
        in_specs=[_vmem()] * 8,
        out_specs=(_vmem(), _vmem()),
    )(ah, wh, bnh, rh, al, wl, bnl, rl)


# ----------------------------------------------------------------------------
# Channel-major (C, N, H, W) layout glue - plain JAX, outside the kernels.
# ----------------------------------------------------------------------------
def cm_avg_pool2x2(x):                     # (C, N, H, W) -> (C, N, H/2, W/2)
    c, n, h, w = x.shape
    return x.reshape(c, n, h // 2, 2, w // 2, 2).mean(axis=(3, 5))


def cm_upsample2x(x):                      # (C, N, h, w) -> (C, N, 2h, 2w)
    return jnp.repeat(jnp.repeat(x, 2, axis=2), 2, axis=3)


def cm_im2col_3x3_pad1(x):
    """(C, N, H, W) -> (9*C, N, H, W); K-row order (dy, dx, c) to match _pack_3x3."""
    c, n, h, w = x.shape
    xp = jnp.pad(x, ((0, 0), (0, 0), (1, 1), (1, 1)))
    rows = [xp[:, :, dy:dy + h, dx:dx + w] for dy in range(3) for dx in range(3)]
    return jnp.concatenate(rows, axis=0)


# ----------------------------------------------------------------------------
# Weight / BN packing for the transposed, K-concatenated GEMMs
# ----------------------------------------------------------------------------
def _pack_1x1(w):                          # torch (Cout, Cin, 1, 1) -> (Cout, Cin)
    return w[:, :, 0, 0]


def _pack_3x3(w):                          # torch (Cout, Cin, 3, 3) -> (Cout, 9*Cin), (dy,dx,cin)
    return jnp.transpose(w, (0, 2, 3, 1)).reshape(w.shape[0], -1)


def _pack_bn(scale, shift):                # -> (C, 2): col 0 = scale, col 1 = shift
    return jnp.stack([scale, shift], axis=1).astype(jnp.float32)


# ----------------------------------------------------------------------------
# Deterministic synthetic parameters (eval-mode BN folded to scale/shift)
# ----------------------------------------------------------------------------
def init_params(key, inplanes=16, planes=4, base_width=64, groups=1):
    width = int(planes * (base_width / 64.0)) * groups      # 4
    out_ch = planes * 4                                     # expansion = 4
    ci_l, ci_h = inplanes // 2, inplanes - inplanes // 2    # 8, 8
    cw_l, cw_h = width // 2, width - width // 2             # 2, 2
    co_l, co_h = out_ch // 2, out_ch - out_ch // 2          # 8, 8

    keys = iter(jax.random.split(key, 64))

    def conv_w(cout, cin, k):
        fan_in = cin * k * k
        return jax.random.normal(next(keys), (cout, cin, k, k), jnp.float32) / math.sqrt(fan_in)

    def bn(c):
        gamma = 1.0 + 0.1 * jax.random.normal(next(keys), (c,), jnp.float32)
        beta = 0.1 * jax.random.normal(next(keys), (c,), jnp.float32)
        mean = 0.1 * jax.random.normal(next(keys), (c,), jnp.float32)
        var = 1.0 + 0.1 * jax.random.uniform(next(keys), (c,), jnp.float32)
        scale = gamma / jnp.sqrt(var + 1e-5)
        shift = beta - mean * scale
        return scale, shift

    raw = {
        "w1_hh": conv_w(cw_h, ci_h, 1), "w1_hl": conv_w(cw_l, ci_h, 1),
        "w1_lh": conv_w(cw_h, ci_l, 1), "w1_ll": conv_w(cw_l, ci_l, 1),
        "bn1_h": bn(cw_h), "bn1_l": bn(cw_l),
        "w2_hh": conv_w(cw_h, cw_h, 3), "w2_hl": conv_w(cw_l, cw_h, 3),
        "w2_lh": conv_w(cw_h, cw_l, 3), "w2_ll": conv_w(cw_l, cw_l, 3),
        "bn2_h": bn(cw_h), "bn2_l": bn(cw_l),
        "w3_hh": conv_w(co_h, cw_h, 1), "w3_hl": conv_w(co_l, cw_h, 1),
        "w3_lh": conv_w(co_h, cw_l, 1), "w3_ll": conv_w(co_l, cw_l, 1),
        "bn3_h": bn(co_h), "bn3_l": bn(co_l),
    }

    bf16 = jnp.bfloat16
    packed = {
        # stage 1 (1x1): K = [high channels | (upsampled) low channels]
        "w1_h": jnp.concatenate([_pack_1x1(raw["w1_hh"]), _pack_1x1(raw["w1_lh"])], axis=1).astype(bf16),
        "w1_l": jnp.concatenate([_pack_1x1(raw["w1_hl"]), _pack_1x1(raw["w1_ll"])], axis=1).astype(bf16),
        "bn1_h": _pack_bn(*raw["bn1_h"]), "bn1_l": _pack_bn(*raw["bn1_l"]),
        # stage 2 (3x3): K = [9*high channels | 9*low channels]
        "w2_h": jnp.concatenate([_pack_3x3(raw["w2_hh"]), _pack_3x3(raw["w2_lh"])], axis=1).astype(bf16),
        "w2_l": jnp.concatenate([_pack_3x3(raw["w2_hl"]), _pack_3x3(raw["w2_ll"])], axis=1).astype(bf16),
        "bn2_h": _pack_bn(*raw["bn2_h"]), "bn2_l": _pack_bn(*raw["bn2_l"]),
        # stage 3 (1x1)
        "w3_h": jnp.concatenate([_pack_1x1(raw["w3_hh"]), _pack_1x1(raw["w3_lh"])], axis=1).astype(bf16),
        "w3_l": jnp.concatenate([_pack_1x1(raw["w3_hl"]), _pack_1x1(raw["w3_ll"])], axis=1).astype(bf16),
        "bn3_h": _pack_bn(*raw["bn3_h"]), "bn3_l": _pack_bn(*raw["bn3_l"]),
    }
    return packed, raw


# ----------------------------------------------------------------------------
# Bottleneck forward (stride=1, downsample=None, output=False), NCHW boundary
# ----------------------------------------------------------------------------
@jax.jit
def bottleneck_forward(x_h, x_l, p):
    bf16 = jnp.bfloat16
    n, ci_h, hh, ww = x_h.shape
    ci_l = x_l.shape[1]
    h2, w2 = hh // 2, ww // 2
    p_hi, p_lo = n * hh * ww, n * h2 * w2

    xh = jnp.transpose(x_h, (1, 0, 2, 3))          # (Ci_h, N, H, W)
    xl = jnp.transpose(x_l, (1, 0, 2, 3))          # (Ci_l, N, H/2, W/2)

    # ---- conv1: octave 1x1 + BN + ReLU (1x1 commutes with nearest upsample) ----
    a1_h = jnp.concatenate([xh.reshape(ci_h, p_hi),
                            cm_upsample2x(xl).reshape(ci_l, p_hi)], axis=0)
    a1_l = jnp.concatenate([cm_avg_pool2x2(xh).reshape(ci_h, p_lo),
                            xl.reshape(ci_l, p_lo)], axis=0)
    y1_h, y1_l = octave_stage(a1_h.astype(bf16), p["w1_h"], p["bn1_h"],
                              a1_l.astype(bf16), p["w1_l"], p["bn1_l"])
    cw_h, cw_l = p["w1_h"].shape[0], p["w1_l"].shape[0]
    y1_h = y1_h.reshape(cw_h, n, hh, ww)
    y1_l = y1_l.reshape(cw_l, n, h2, w2)

    # ---- conv2: octave 3x3 (pad=1) + BN + ReLU ---------------------------------
    # upsample(conv3x3(x_l)) == conv3x3 on nearest-upsampled im2col patches, so the
    # l2h path shares the single high-res matmul via K concatenation.
    pt_h = cm_im2col_3x3_pad1(y1_h)                     # (9*cw_h, N, H, W)
    pt_l = cm_im2col_3x3_pad1(y1_l)                     # (9*cw_l, N, H/2, W/2)
    pt_hp = cm_im2col_3x3_pad1(cm_avg_pool2x2(y1_h))    # (9*cw_h, N, H/2, W/2)
    a2_h = jnp.concatenate([pt_h.reshape(9 * cw_h, p_hi),
                            cm_upsample2x(pt_l).reshape(9 * cw_l, p_hi)], axis=0)
    a2_l = jnp.concatenate([pt_hp.reshape(9 * cw_h, p_lo),
                            pt_l.reshape(9 * cw_l, p_lo)], axis=0)
    y2_h, y2_l = octave_stage(a2_h.astype(bf16), p["w2_h"], p["bn2_h"],
                              a2_l.astype(bf16), p["w2_l"], p["bn2_l"])
    y2_h4 = y2_h.reshape(cw_h, n, hh, ww)
    y2_l4 = y2_l.reshape(cw_l, n, h2, w2)

    # ---- conv3: octave 1x1 + BN, residual add, ReLU ----------------------------
    a3_h = jnp.concatenate([y2_h, cm_upsample2x(y2_l4).reshape(cw_l, p_hi)], axis=0)
    a3_l = jnp.concatenate([cm_avg_pool2x2(y2_h4).reshape(cw_h, p_lo), y2_l], axis=0)
    out_h, out_l = octave_stage_residual(
        a3_h.astype(bf16), p["w3_h"], p["bn3_h"], xh.reshape(ci_h, p_hi),
        a3_l.astype(bf16), p["w3_l"], p["bn3_l"], xl.reshape(ci_l, p_lo))
    co_h, co_l = p["w3_h"].shape[0], p["w3_l"].shape[0]

    out_h = jnp.transpose(out_h.reshape(co_h, n, hh, ww), (1, 0, 2, 3))
    out_l = jnp.transpose(out_l.reshape(co_l, n, h2, w2), (1, 0, 2, 3))
    return out_h, out_l


# ----------------------------------------------------------------------------
# Independent plain-JAX reference (follows the PyTorch OctaveConv code path)
# ----------------------------------------------------------------------------
@jax.jit
def bottleneck_reference(x_h, x_l, raw):
    bf16 = jnp.bfloat16

    def conv(x, w, pad):
        return lax.conv_general_dilated(
            x.astype(bf16), w.astype(bf16), (1, 1), [(pad, pad), (pad, pad)],
            dimension_numbers=("NCHW", "OIHW", "NCHW"),
            preferred_element_type=jnp.float32)

    def pool(x):
        nb, c, h, w = x.shape
        return x.reshape(nb, c, h // 2, 2, w // 2, 2).mean(axis=(3, 5))

    def up(x):
        return jnp.repeat(jnp.repeat(x, 2, axis=2), 2, axis=3)

    def bn(x, sb):
        s, b = sb
        return x * s[None, :, None, None] + b[None, :, None, None]

    def oct_block(xh, xl, whh, whl, wlh, wll, bnh, bnl, pad, act):
        h = conv(xh, whh, pad) + up(conv(xl, wlh, pad))
        l = conv(pool(xh), whl, pad) + conv(xl, wll, pad)
        h, l = bn(h, bnh), bn(l, bnl)
        if act:
            h, l = jnp.maximum(h, 0.0), jnp.maximum(l, 0.0)
        return h, l

    y_h, y_l = oct_block(x_h, x_l, raw["w1_hh"], raw["w1_hl"], raw["w1_lh"],
                         raw["w1_ll"], raw["bn1_h"], raw["bn1_l"], 0, True)
    y_h, y_l = oct_block(y_h, y_l, raw["w2_hh"], raw["w2_hl"], raw["w2_lh"],
                         raw["w2_ll"], raw["bn2_h"], raw["bn2_l"], 1, True)
    y_h, y_l = oct_block(y_h, y_l, raw["w3_hh"], raw["w3_hl"], raw["w3_lh"],
                         raw["w3_ll"], raw["bn3_h"], raw["bn3_l"], 0, False)
    return jnp.maximum(y_h + x_h, 0.0), jnp.maximum(y_l + x_l, 0.0)


# ----------------------------------------------------------------------------
if __name__ == "__main__":
    key = jax.random.PRNGKey(0)
    k_xh, k_xl, k_p = jax.random.split(key, 3)

    N, H, W = 2, 16, 16
    inplanes, planes = 16, 4          # inplanes == planes*expansion -> identity residual
    ci_l, ci_h = inplanes // 2, inplanes - inplanes // 2

    x_h = jax.random.normal(k_xh, (N, ci_h, H, W), jnp.float32)
    x_l = jax.random.normal(k_xl, (N, ci_l, H // 2, W // 2), jnp.float32)

    packed, raw = init_params(k_p, inplanes=inplanes, planes=planes)

    out_h, out_l = bottleneck_forward(x_h, x_l, packed)
    jax.block_until_ready((out_h, out_l))

    out_ch = planes * 4
    assert out_h.shape == (N, out_ch - out_ch // 2, H, W), out_h.shape
    assert out_l.shape == (N, out_ch // 2, H // 2, W // 2), out_l.shape

    ref_h, ref_l = bottleneck_reference(x_h, x_l, raw)
    assert bool(jnp.allclose(out_h, ref_h, rtol=2e-2, atol=2e-2)), \
        float(jnp.max(jnp.abs(out_h - ref_h)))
    assert bool(jnp.allclose(out_l, ref_l, rtol=2e-2, atol=2e-2)), \
        float(jnp.max(jnp.abs(out_l - ref_l)))

    print("KERNEL_OK")
</pallas_src>

<mosaic_0001>
module attributes {stable_mosaic.version = 11 : i64} {
  func.func @_stage_kernel(%arg0: memref<16x512xbf16, #tpu.memory_space<vmem>>, %arg1: memref<2x16xbf16, #tpu.memory_space<vmem>>, %arg2: memref<2x2xf32, #tpu.memory_space<vmem>>, %arg3: memref<16x128xbf16, #tpu.memory_space<vmem>>, %arg4: memref<2x16xbf16, #tpu.memory_space<vmem>>, %arg5: memref<2x2xf32, #tpu.memory_space<vmem>>, %arg6: memref<2x512xf32, #tpu.memory_space<vmem>>, %arg7: memref<2x128xf32, #tpu.memory_space<vmem>>) attributes {dimension_semantics = [], scalar_prefetch = 0 : i64, scratch_operands = 0 : i64, tpu.core_type = #tpu.core_type<tc>} {
    %c0 = arith.constant 0 : index
    %c0_0 = arith.constant 0 : index
    %0 = vector.load %arg1[%c0, %c0_0] : memref<2x16xbf16, #tpu.memory_space<vmem>>, vector<2x16xbf16>
    %c0_1 = arith.constant 0 : index
    %c0_2 = arith.constant 0 : index
    %1 = vector.load %arg0[%c0_1, %c0_2] : memref<16x512xbf16, #tpu.memory_space<vmem>>, vector<16x512xbf16>
    %cst = arith.constant dense<0.000000e+00> : vector<2x512xf32>
    %2 = tpu.matmul %0, %1, %cst {dimension_numbers = #tpu.dot_dimension_numbers<[1], [0], [0], [1], [0, 0, 1, 1], [], []>} : vector<2x16xbf16>, vector<16x512xbf16>, vector<2x512xf32> -> vector<2x512xf32>
    %c0_3 = arith.constant 0 : index
    %c0_4 = arith.constant 0 : index
    %3 = vector.load %arg2[%c0_3, %c0_4] : memref<2x2xf32, #tpu.memory_space<vmem>>, vector<2x2xf32>
    %4 = vector.extract_strided_slice %3 {offsets = [0, 0], sizes = [2, 1], strides = [1, 1]} : vector<2x2xf32> to vector<2x1xf32>
    %5 = vector.broadcast %4 : vector<2x1xf32> to vector<2x512xf32>
    %6 = arith.mulf %2, %5 : vector<2x512xf32>
    %7 = vector.extract_strided_slice %3 {offsets = [0, 1], sizes = [2, 1], strides = [1, 1]} : vector<2x2xf32> to vector<2x1xf32>
    %8 = vector.broadcast %7 : vector<2x1xf32> to vector<2x512xf32>
    %9 = arith.addf %6, %8 : vector<2x512xf32>
    %cst_5 = arith.constant 0.000000e+00 : f32
    %10 = vector.broadcast %cst_5 : f32 to vector<2x512xf32>
    %11 = arith.maximumf %9, %10 : vector<2x512xf32>
    %c0_6 = arith.constant 0 : index
    %c0_7 = arith.constant 0 : index
    %12 = vector.load %arg6[%c0_6, %c0_7] : memref<2x512xf32, #tpu.memory_space<vmem>>, vector<2x512xf32>
    tpu.vector_store %arg6[%c0_6, %c0_7], %11 {strides = array<i32>} : memref<2x512xf32, #tpu.memory_space<vmem>>, vector<2x512xf32>,
    %c0_8 = arith.constant 0 : index
    %c0_9 = arith.constant 0 : index
    %13 = vector.load %arg4[%c0_8, %c0_9] : memref<2x16xbf16, #tpu.memory_space<vmem>>, vector<2x16xbf16>
    %c0_10 = arith.constant 0 : index
    %c0_11 = arith.constant 0 : index
    %14 = vector.load %arg3[%c0_10, %c0_11] : memref<16x128xbf16, #tpu.memory_space<vmem>>, vector<16x128xbf16>
    %cst_12 = arith.constant dense<0.000000e+00> : vector<2x128xf32>
    %15 = tpu.matmul %13, %14, %cst_12 {dimension_numbers = #tpu.dot_dimension_numbers<[1], [0], [0], [1], [0, 0, 1, 1], [], []>} : vector<2x16xbf16>, vector<16x128xbf16>, vector<2x128xf32> -> vector<2x128xf32>
    %c0_13 = arith.constant 0 : index
    %c0_14 = arith.constant 0 : index
    %16 = vector.load %arg5[%c0_13, %c0_14] : memref<2x2xf32, #tpu.memory_space<vmem>>, vector<2x2xf32>
    %17 = vector.extract_strided_slice %16 {offsets = [0, 0], sizes = [2, 1], strides = [1, 1]} : vector<2x2xf32> to vector<2x1xf32>
    %18 = vector.broadcast %17 : vector<2x1xf32> to vector<2x128xf32>
    %19 = arith.mulf %15, %18 : vector<2x128xf32>
    %20 = vector.extract_strided_slice %16 {offsets = [0, 1], sizes = [2, 1], strides = [1, 1]} : vector<2x2xf32> to vector<2x1xf32>
    %21 = vector.broadcast %20 : vector<2x1xf32> to vector<2x128xf32>
    %22 = arith.addf %19, %21 : vector<2x128xf32>
    %cst_15 = arith.constant 0.000000e+00 : f32
    %23 = vector.broadcast %cst_15 : f32 to vector<2x128xf32>
    %24 = arith.maximumf %22, %23 : vector<2x128xf32>
    %c0_16 = arith.constant 0 : index
    %c0_17 = arith.constant 0 : index
    %25 = vector.load %arg7[%c0_16, %c0_17] : memref<2x128xf32, #tpu.memory_space<vmem>>, vector<2x128xf32>
    tpu.vector_store %arg7[%c0_16, %c0_17], %24 {strides = array<i32>} : memref<2x128xf32, #tpu.memory_space<vmem>>, vector<2x128xf32>,
    return
  }
}

module attributes {stable_mosaic.version = 11 : i64} {
  func.func @_stage_kernel(%arg0: memref<36x512xbf16, #tpu.memory_space<vmem>>, %arg1: memref<2x36xbf16, #tpu.memory_space<vmem>>, %arg2: memref<2x2xf32, #tpu.memory_space<vmem>>, %arg3: memref<36x128xbf16, #tpu.memory_space<vmem>>, %arg4: memref<2x36xbf16, #tpu.memory_space<vmem>>, %arg5: memref<2x2xf32, #tpu.memory_space<vmem>>, %arg6: memref<2x512xf32, #tpu.memory_space<vmem>>, %arg7: memref<2x128xf32, #tpu.memory_space<vmem>>) attributes {dimension_semantics = [], scalar_prefetch = 0 : i64, scratch_operands = 0 : i64, tpu.core_type = #tpu.core_type<tc>} {
    %c0 = arith.constant 0 : index
    %c0_0 = arith.constant 0 : index
    %0 = vector.load %arg1[%c0, %c0_0] : memref<2x36xbf16, #tpu.memory_space<vmem>>, vector<2x36xbf16>
    %c0_1 = arith.constant 0 : index
    %c0_2 = arith.constant 0 : index
    %1 = vector.load %arg0[%c0_1, %c0_2] : memref<36x512xbf16, #tpu.memory_space<vmem>>, vector<36x512xbf16>
    %cst = arith.constant dense<0.000000e+00> : vector<2x512xf32>
    %2 = tpu.matmul %0, %1, %cst {dimension_numbers = #tpu.dot_dimension_numbers<[1], [0], [0], [1], [0, 0, 1, 1], [], []>} : vector<2x36xbf16>, vector<36x512xbf16>, vector<2x512xf32> -> vector<2x512xf32>
    %c0_3 = arith.constant 0 : index
    %c0_4 = arith.constant 0 : index
    %3 = vector.load %arg2[%c0_3, %c0_4] : memref<2x2xf32, #tpu.memory_space<vmem>>, vector<2x2xf32>
    %4 = vector.extract_strided_slice %3 {offsets = [0, 0], sizes = [2, 1], strides = [1, 1]} : vector<2x2xf32> to vector<2x1xf32>
    %5 = vector.broadcast %4 : vector<2x1xf32> to vector<2x512xf32>
    %6 = arith.mulf %2, %5 : vector<2x512xf32>
    %7 = vector.extract_strided_slice %3 {offsets = [0, 1], sizes = [2, 1], strides = [1, 1]} : vector<2x2xf32> to vector<2x1xf32>
    %8 = vector.broadcast %7 : vector<2x1xf32> to vector<2x512xf32>
    %9 = arith.addf %6, %8 : vector<2x512xf32>
    %cst_5 = arith.constant 0.000000e+00 : f32
    %10 = vector.broadcast %cst_5 : f32 to vector<2x512xf32>
    %11 = arith.maximumf %9, %10 : vector<2x512xf32>
    %c0_6 = arith.constant 0 : index
    %c0_7 = arith.constant 0 : index
    %12 = vector.load %arg6[%c0_6, %c0_7] : memref<2x512xf32, #tpu.memory_space<vmem>>, vector<2x512xf32>
    tpu.vector_store %arg6[%c0_6, %c0_7], %11 {strides = array<i32>} : memref<2x512xf32, #tpu.memory_space<vmem>>, vector<2x512xf32>,
    %c0_8 = arith.constant 0 : index
    %c0_9 = arith.constant 0 : index
    %13 = vector.load %arg4[%c0_8, %c0_9] : memref<2x36xbf16, #tpu.memory_space<vmem>>, vector<2x36xbf16>
    %c0_10 = arith.constant 0 : index
    %c0_11 = arith.constant 0 : index
    %14 = vector.load %arg3[%c0_10, %c0_11] : memref<36x128xbf16, #tpu.memory_space<vmem>>, vector<36x128xbf16>
    %cst_12 = arith.constant dense<0.000000e+00> : vector<2x128xf32>
    %15 = tpu.matmul %13, %14, %cst_12 {dimension_numbers = #tpu.dot_dimension_numbers<[1], [0], [0], [1], [0, 0, 1, 1], [], []>} : vector<2x36xbf16>, vector<36x128xbf16>, vector<2x128xf32> -> vector<2x128xf32>
    %c0_13 = arith.constant 0 : index
    %c0_14 = arith.constant 0 : index
    %16 = vector.load %arg5[%c0_13, %c0_14] : memref<2x2xf32, #tpu.memory_space<vmem>>, vector<2x2xf32>
    %17 = vector.extract_strided_slice %16 {offsets = [0, 0], sizes = [2, 1], strides = [1, 1]} : vector<2x2xf32> to vector<2x1xf32>
    %18 = vector.broadcast %17 : vector<2x1xf32> to vector<2x128xf32>
    %19 = arith.mulf %15, %18 : vector<2x128xf32>
    %20 = vector.extract_strided_slice %16 {offsets = [0, 1], sizes = [2, 1], strides = [1, 1]} : vector<2x2xf32> to vector<2x1xf32>
    %21 = vector.broadcast %20 : vector<2x1xf32> to vector<2x128xf32>
    %22 = arith.addf %19, %21 : vector<2x128xf32>
    %cst_15 = arith.constant 0.000000e+00 : f32
    %23 = vector.broadcast %cst_15 : f32 to vector<2x128xf32>
    %24 = arith.maximumf %22, %23 : vector<2x128xf32>
    %c0_16 = arith.constant 0 : index
    %c0_17 = arith.constant 0 : index
    %25 = vector.load %arg7[%c0_16, %c0_17] : memref<2x128xf32, #tpu.memory_space<vmem>>, vector<2x128xf32>
    tpu.vector_store %arg7[%c0_16, %c0_17], %24 {strides = array<i32>} : memref<2x128xf32, #tpu.memory_space<vmem>>, vector<2x128xf32>,
    return
  }
}

module attributes {stable_mosaic.version = 11 : i64} {
  func.func @_stage_res_kernel(%arg0: memref<4x512xbf16, #tpu.memory_space<vmem>>, %arg1: memref<8x4xbf16, #tpu.memory_space<vmem>>, %arg2: memref<8x2xf32, #tpu.memory_space<vmem>>, %arg3: memref<8x512xf32, #tpu.memory_space<vmem>>, %arg4: memref<4x128xbf16, #tpu.memory_space<vmem>>, %arg5: memref<8x4xbf16, #tpu.memory_space<vmem>>, %arg6: memref<8x2xf32, #tpu.memory_space<vmem>>, %arg7: memref<8x128xf32, #tpu.memory_space<vmem>>, %arg8: memref<8x512xf32, #tpu.memory_space<vmem>>, %arg9: memref<8x128xf32, #tpu.memory_space<vmem>>) attributes {dimension_semantics = [], scalar_prefetch = 0 : i64, scratch_operands = 0 : i64, tpu.core_type = #tpu.core_type<tc>} {
    %c0 = arith.constant 0 : index
    %c0_0 = arith.constant 0 : index
    %0 = vector.load %arg1[%c0, %c0_0] : memref<8x4xbf16, #tpu.memory_space<vmem>>, vector<8x4xbf16>
    %c0_1 = arith.constant 0 : index
    %c0_2 = arith.constant 0 : index
    %1 = vector.load %arg0[%c0_1, %c0_2] : memref<4x512xbf16, #tpu.memory_space<vmem>>, vector<4x512xbf16>
    %cst = arith.constant dense<0.000000e+00> : vector<8x512xf32>
    %2 = tpu.matmul %0, %1, %cst {dimension_numbers = #tpu.dot_dimension_numbers<[1], [0], [0], [1], [0, 0, 1, 1], [], []>} : vector<8x4xbf16>, vector<4x512xbf16>, vector<8x512xf32> -> vector<8x512xf32>
    %c0_3 = arith.constant 0 : index
    %c0_4 = arith.constant 0 : index
    %3 = vector.load %arg2[%c0_3, %c0_4] : memref<8x2xf32, #tpu.memory_space<vmem>>, vector<8x2xf32>
    %4 = vector.extract_strided_slice %3 {offsets = [0, 0], sizes = [8, 1], strides = [1, 1]} : vector<8x2xf32> to vector<8x1xf32>
    %5 = vector.broadcast %4 : vector<8x1xf32> to vector<8x512xf32>
    %6 = arith.mulf %2, %5 : vector<8x512xf32>
    %7 = vector.extract_strided_slice %3 {offsets = [0, 1], sizes = [8, 1], strides = [1, 1]} : vector<8x2xf32> to vector<8x1xf32>
    %8 = vector.broadcast %7 : vector<8x1xf32> to vector<8x512xf32>
    %9 = arith.addf %6, %8 : vector<8x512xf32>
    %c0_5 = arith.constant 0 : index
    %c0_6 = arith.constant 0 : index
    %10 = vector.load %arg3[%c0_5, %c0_6] : memref<8x512xf32, #tpu.memory_space<vmem>>, vector<8x512xf32>
    %11 = arith.addf %9, %10 : vector<8x512xf32>
    %cst_7 = arith.constant 0.000000e+00 : f32
    %12 = vector.broadcast %cst_7 : f32 to vector<8x512xf32>
    %13 = arith.maximumf %11, %12 : vector<8x512xf32>
    %c0_8 = arith.constant 0 : index
    %c0_9 = arith.constant 0 : index
    %14 = vector.load %arg8[%c0_8, %c0_9] : memref<8x512xf32, #tpu.memory_space<vmem>>, vector<8x512xf32>
    tpu.vector_store %arg8[%c0_8, %c0_9], %13 {strides = array<i32>} : memref<8x512xf32, #tpu.memory_space<vmem>>, vector<8x512xf32>,
    %c0_10 = arith.constant 0 : index
    %c0_11 = arith.constant 0 : index
    %15 = vector.load %arg5[%c0_10, %c0_11] : memref<8x4xbf16, #tpu.memory_space<vmem>>, vector<8x4xbf16>
    %c0_12 = arith.constant 0 : index
    %c0_13 = arith.constant 0 : index
    %16 = vector.load %arg4[%c0_12, %c0_13] : memref<4x128xbf16, #tpu.memory_space<vmem>>, vector<4x128xbf16>
    %cst_14 = arith.constant dense<0.000000e+00> : vector<8x128xf32>
    %17 = tpu.matmul %15, %16, %cst_14 {dimension_numbers = #tpu.dot_dimension_numbers<[1], [0], [0], [1], [0, 0, 1, 1], [], []>} : vector<8x4xbf16>, vector<4x128xbf16>, vector<8x128xf32> -> vector<8x128xf32>
    %c0_15 = arith.constant 0 : index
    %c0_16 = arith.constant 0 : index
    %18 = vector.load %arg6[%c0_15, %c0_16] : memref<8x2xf32, #tpu.memory_space<vmem>>, vector<8x2xf32>
    %19 = vector.extract_strided_slice %18 {offsets = [0, 0], sizes = [8, 1], strides = [1, 1]} : vector<8x2xf32> to vector<8x1xf32>
    %20 = vector.broadcast %19 : vector<8x1xf32> to vector<8x128xf32>
    %21 = arith.mulf %17, %20 : vector<8x128xf32>
    %22 = vector.extract_strided_slice %18 {offsets = [0, 1], sizes = [8, 1], strides = [1, 1]} : vector<8x2xf32> to vector<8x1xf32>
    %23 = vector.broadcast %22 : vector<8x1xf32> to vector<8x128xf32>
    %24 = arith.addf %21, %23 : vector<8x128xf32>
    %c0_17 = arith.constant 0 : index
    %c0_18 = arith.constant 0 : index
    %25 = vector.load %arg7[%c0_17, %c0_18] : memref<8x128xf32, #tpu.memory_space<vmem>>, vector<8x128xf32>
    %26 = arith.addf %24, %25 : vector<8x128xf32>
    %cst_19 = arith.constant 0.000000e+00 : f32
    %27 = vector.broadcast %cst_19 : f32 to vector<8x128xf32>
    %28 = arith.maximumf %26, %27 : vector<8x128xf32>
    %c0_20 = arith.constant 0 : index
    %c0_21 = arith.constant 0 : index
    %29 = vector.load %arg9[%c0_20, %c0_21] : memref<8x128xf32, #tpu.memory_space<vmem>>, vector<8x128xf32>
    tpu.vector_store %arg9[%c0_20, %c0_21], %28 {strides = array<i32>} : memref<8x128xf32, #tpu.memory_space<vmem>>, vector<8x128xf32>,
    return
  }
}

</mosaic_0001>

<bundles_post_ra>
// kernel: bottleneck_forward.3
= control target key start
LH: loop header
LB: loop body
LE: loop exit
PB: predicated region body
PF: predicated region fallthrough
CT: control target
= control target key end

     0   :  { %v288_v1 = vmov 0   ;;  %vm51_vm0 = vcmask 130048   ;;  %v289_v9 = vmov 0.0   ;;  %vm290_vm1 = vmmov 0   ;;  %s369_s0 = inlined_call_operand.vmem [shape: bf16[16,512], index: 0, kind: input, shape index: {}]   ;;  %s370_s1 = inlined_call_operand.vmem [shape: bf16[2,16], index: 1, kind: input, shape index: {}]   ;;  %s371_s3 = inlined_call_operand.vmem [shape: bf16[16,128], index: 3, kind: input, shape index: {}]   ;;  %s372_s2 = inlined_call_operand.vmem [shape: f32[2,2], index: 2, kind: input, shape index: {}]   ;;  %s373_s5 = inlined_call_operand.vmem [shape: f32[2,2], index: 5, kind: input, shape index: {}]   ;;  %s374_s4 = inlined_call_operand.vmem [shape: bf16[2,16], index: 4, kind: input, shape index: {}]   ;;  %s375_s6 = inlined_call_operand.vmem [shape: f32[2,512], index: 6, kind: output, shape index: {0}]   ;;  %s376_s7 = inlined_call_operand.vmem [shape: f32[2,128], index: 7, kind: output, shape index: {1}]  }
   0x1   :  { %v281_v0 = vld [vmem:[%s369_s0 + $0x4] ss:$16 sps:$4 sm:$0xff]   ;;  %87 = vmatprep.mubr.bf16.mxu0 %v288_v1  ;;  %128 = vmatprep.mubr.bf16.mxu1 %v288_v1  ;;  %v283_v2 = vld [vmem:[%s369_s0 + $0xc] ss:$16 sps:$4 sm:$0xff]   ;;  %v285_v3 = vld [vmem:[%s369_s0] ss:$16 sps:$4 sm:$0xff]   ;;  %v168_v15 = vlaneseq }
   0x2   :  { %277 = vset.pattern.permute.xlu0 %v288_v1  ;;  %279 = vset.pattern.permute.xlu1 %v288_v1  ;;  %v286_v4 = vld [vmem:[%s369_s0 + $0x8] ss:$16 sps:$4 sm:$0xff]   ;;  %v26_v5 = vld [vmem:[%s370_s1] sm:$0x1]  ;;  %v291_v10 = vmov 1  }
   0x3   :  { %69 = vmatprep.subr.bf16.mxu0 %v281_v0  ;;  %110 = vmatprep.subr.bf16.mxu1 %v283_v2  ;;  %v287_v6 = vld [vmem:[%s371_s3] sm:$0xff]   ;;  %v292_v13 = vmov 1983009808   ;;  %v169_v24 = vshrl.u32 %v168_v15, 7 }
   0x4   :  { %70 = vmatpush1.bf16.msra.mxu0 %v285_v3  ;;  %111 = vmatpush1.bf16.msra.mxu1 %v286_v4  ;;  %v137_v7 = vld [vmem:[%s372_s2] sm:$0x3]  ;;  %v166_v14 = vunpack.c.l.s4 %v292_v13 }
   0x5   :  { %v234_v8 = vld [vmem:[%s373_s5] sm:$0x3]  ;;  %266 = vmatprep.subr.bf16.mxu0 %v289_v9  ;;  %140 = vperm.xlu0 %277, %v137_v7  }
   0x6   :  { %237 = vperm.xlu1 %279, %v234_v8   ;;  %v182_v11 = vld [vmem:[%s374_s4] sm:$0x1]  ;;  %v167_v23 = vunpack.c.0.s8 %v166_v14 }
   0x7   :  { %260 = vmatmul.mubr.msk.bf16.vlgmr.msra.gmra.mxu0 %vm51_vm0, %v26_v5  ;;  %261 = vmatmul.mubr.msk.bf16.vlgmr.msra.gmra.mxu1 %vm51_vm0, %v26_v5 }
   0x8   :  { %267 = vmatpush3.bf16.msra.mxu0 %v287_v6  ;;  %268 = vmatprep.mubr.msk.bf16.mxu0 %vm290_vm1, %v289_v9  ;;  %v170_v34 = vsub.s32 %v167_v23, %v169_v24 }
   0x9   :  { %278 = vset.pattern.permute.xlu0 %v291_v10 }
   0xa   :  { %148 = vperm.xlu0 %278, %v137_v7   ;;  %280 = vset.pattern.permute.xlu1 %v291_v10 }
   0xb   :  { %242 = vperm.xlu1 %280, %v234_v8  }
   0xf   :  { %269 = vmatmul.mubr.msk.bf16.vlgmr.msra.gmra.mxu0 %vm51_vm0, %v182_v11 }
  0x80   :  { %v141_v12 = vpop.permute.xlu0 %140 }
  0x81   :  { %v238_v21 = vpop.permute.xlu1 %237 }
  0x85   :  { %v149_v16 = vpop.permute.xlu0 %148 }
  0x86   :  { %v243_v42 = vpop.permute.xlu1 %242 }
  0xc7   :  { %v89_v17 = vpop.f32.mrf.mxu0  ;;  %v130_v18 = vpop.f32.mrf.mxu1 }
  0xc8   :  { %v143_v19 = vmul.f32 %v141_v12, %v89_v17  ;;  %v145_v20 = vmul.f32 %v141_v12, %v130_v18 }
  0xc9   :  { %v91_v22 = vpop.f32.mrf.mxu0  ;;  %v132_v25 = vpop.f32.mrf.mxu1 }
  0xca   :  { %v151_v26 = vadd.f32 %v149_v16, %v143_v19  ;;  %v153_v27 = vadd.f32 %v149_v16, %v145_v20  ;;  %v144_v28 = vmul.f32 %v141_v12, %v91_v22  ;;  %v146_v29 = vmul.f32 %v141_v12, %v132_v25 }
  0xcb   :  { %v93_v30 = vpop.f32.mrf.mxu0  ;;  %v134_v31 = vpop.f32.mrf.mxu1 }
  0xcc   :  { %v152_v32 = vadd.f32 %v149_v16, %v144_v28  ;;  %v154_v33 = vadd.f32 %v149_v16, %v146_v29  ;;  %v155_v37 = vmax.f32 %v151_v26, 0.0  ;;  %v157_v38 = vmax.f32 %v153_v27, 0.0 }
  0xcd   :  { %v94_v35 = vpop.f32.mrf.mxu0  ;;  %v135_v36 = vpop.f32.mrf.mxu1 }
  0xce   :  { %v156_v39 = vmax.f32 %v152_v32, 0.0  ;;  %v158_v40 = vmax.f32 %v154_v33, 0.0 }
  0xcf   :  { %v228_v41 = vpop.f32.mrf.mxu0 }
  0xd0   :  { %v163_v43 = vcombine.low %v155_v37, %v156_v39  ;;  %v164_v44 = vcombine.low %v157_v38, %v158_v40  ;;  %v240_v45 = vmul.f32 %v238_v21, %v228_v41 }
  0xd1   :  { %v270_v46 = vpop.f32.mrf.mxu0 }
  0xd2   :  { %v171_v47 = vrot.slane %v163_v43, %v170_v34  ;;  %v178_v48 = vrot.slane %v164_v44, %v170_v34  ;;  %v245_v49 = vadd.f32 %v243_v42, %v240_v45 }
  0xd3   :  { %v231_v50 = vpop.f32.mrf.mxu0 }
  0xd4   :  { %v179_v51 = vcombine.low %v171_v47, %v178_v48  ;;  %v246_v52 = vmax.f32 %v245_v49, 0.0 }
  0xd5   :  { %v271_v53 = vpop.f32.mrf.mxu0 }
  0xd6   :  { %181 = vst [vmem:[%s375_s6] sm:$0xff] %v179_v51  ;;  %247 = vst [vmem:[%s376_s7] sm:$0x3] %v246_v52 }

// kernel: bottleneck_forward.4
= control target key start
LH: loop header
LB: loop body
LE: loop exit
PB: predicated region body
PF: predicated region fallthrough
CT: control target
= control target key end

     0   :  { %vm91_vm0 = vcmask 1041408   ;;  %v382_v2 = vmov 0   ;;  %vm87_vm1 = vcmask 293888   ;;  %v383_v21 = vmov 0.0   ;;  %s492_s0 = inlined_call_operand.vmem [shape: bf16[36,512], index: 0, kind: input, shape index: {}]   ;;  %s493_s3 = inlined_call_operand.vmem [shape: bf16[36,128], index: 3, kind: input, shape index: {}]   ;;  %s494_s2 = inlined_call_operand.vmem [shape: f32[2,2], index: 2, kind: input, shape index: {}]   ;;  %s495_s5 = inlined_call_operand.vmem [shape: f32[2,2], index: 5, kind: input, shape index: {}]   ;;  %s496_s1 = inlined_call_operand.vmem [shape: bf16[2,36], index: 1, kind: input, shape index: {}]   ;;  %s497_s4 = inlined_call_operand.vmem [shape: bf16[2,36], index: 4, kind: input, shape index: {}]   ;;  %s498_s6 = inlined_call_operand.vmem [shape: f32[2,512], index: 6, kind: output, shape index: {0}]   ;;  %s499_s7 = inlined_call_operand.vmem [shape: f32[2,128], index: 7, kind: output, shape index: {1}]  }
   0x1   :  { %v35_v0 = vld [vmem:[%s492_s0 + $0x40] sm:$0x33]  ;;  %v36_v1 = vld [vmem:[%s492_s0 + $0x48] sm:$0x33]  ;;  %136 = vmatprep.mubr.bf16.mxu0 %v382_v2  ;;  %177 = vmatprep.mubr.bf16.mxu1 %v382_v2  ;;  %v384_v23 = vmov 1   ;;  %vm385_vm2 = vmmov 0   ;;  %v217_v30 = vlaneseq }
   0x2   :  { %v329_v3 = vcombine.high %v35_v0, %v35_v0  ;;  %v331_v4 = vcombine.high %v36_v1, %v36_v1  ;;  %v328_v5 = vcombine.low %v35_v0, %v35_v0  ;;  %v330_v6 = vcombine.low %v36_v1, %v36_v1  ;;  %v367_v7 = vld [vmem:[%s492_s0 + $0x24] ss:$16 sps:$4 sm:$0xff]   ;;  %359 = vset.pattern.permute.xlu0 %v382_v2  ;;  %v369_v8 = vld [vmem:[%s492_s0 + $0x2c] ss:$16 sps:$4 sm:$0xff]   ;;  %v371_v11 = vld [vmem:[%s492_s0 + $0x20] ss:$16 sps:$4 sm:$0xff]  }
   0x3   :  { %361 = vset.pattern.permute.xlu1 %v382_v2  ;;  %v372_v12 = vld [vmem:[%s492_s0 + $0x28] ss:$16 sps:$4 sm:$0xff]   ;;  %v373_v13 = vld [vmem:[%s492_s0 + $0x4] ss:$16 sps:$4 sm:$0xff]   ;;  %v375_v14 = vld [vmem:[%s492_s0 + $0xc] ss:$16 sps:$4 sm:$0xff]  }
   0x4   :  { %332 = vmatprep.subr.msk.bf16.mxu0 %vm91_vm0, %v329_v3  ;;  %334 = vmatprep.subr.msk.bf16.mxu1 %vm91_vm0, %v331_v4  ;;  %v93_v9 = vsel %vm91_vm0, %v328_v5, 0  ;;  %v99_v10 = vsel %vm91_vm0, %v330_v6, 0  ;;  %v377_v15 = vld [vmem:[%s492_s0] ss:$16 sps:$4 sm:$0xff]   ;;  %v378_v16 = vld [vmem:[%s492_s0 + $0x8] ss:$16 sps:$4 sm:$0xff]  }
   0x5   :  { %115 = vmatpush1.bf16.msra.mxu0 %v93_v9  ;;  %156 = vmatpush1.bf16.msra.mxu1 %v99_v10  ;;  %v379_v17 = vld [vmem:[%s493_s3 + $0x10] ss:$0 sps:$4 sm:$0x33]   ;;  %v186_v18 = vld [vmem:[%s494_s2] sm:$0x3]  ;;  %v380_v24 = vld [vmem:[%s493_s3 + $0x8] sm:$0xff]  }
   0x6   :  { %116 = vmatprep.subr.bf16.mxu0 %v367_v7  ;;  %157 = vmatprep.subr.bf16.mxu1 %v369_v8  ;;  %v298_v19 = vld [vmem:[%s495_s5] sm:$0x3]  ;;  %v256_v22 = vsel %vm91_vm0, %v379_v17, 0  ;;  %v386_v28 = vmov 1983009808   ;;  %v218_v39 = vshrl.u32 %v217_v30, 7 }
   0x7   :  { %189 = vperm.xlu0 %359, %v186_v18   ;;  %301 = vperm.xlu1 %361, %v298_v19   ;;  %v26_v20 = vld [vmem:[%s496_s1] sm:$0x1]  ;;  %v215_v29 = vunpack.c.l.s4 %v386_v28 }
   0x8   :  { %v381_v25 = vld [vmem:[%s493_s3] sm:$0xff]  }
   0x9   :  { %117 = vmatpush1.bf16.msra.mxu0 %v371_v11  ;;  %158 = vmatpush1.bf16.msra.mxu1 %v372_v12  ;;  %v231_v26 = vld [vmem:[%s497_s4] sm:$0x1]  ;;  %v216_v38 = vunpack.c.0.s8 %v215_v29 }
   0xa   :  { %118 = vmatprep.subr.bf16.mxu0 %v373_v13  ;;  %159 = vmatprep.subr.bf16.mxu1 %v375_v14 }
   0xb   :  { %360 = vset.pattern.permute.xlu0 %v384_v23  ;;  %362 = vset.pattern.permute.xlu1 %v384_v23  ;;  %v219_v53 = vsub.s32 %v216_v38, %v218_v39 }
   0xc   :  { %197 = vperm.xlu0 %360, %v186_v18   ;;  %306 = vperm.xlu1 %362, %v298_v19  }
   0xd   :  { %119 = vmatpush1.bf16.msra.mxu0 %v377_v15  ;;  %160 = vmatpush1.bf16.msra.mxu1 %v378_v16 }
   0xe   :  { %344 = vmatprep.subr.bf16.mxu0 %v383_v21 }
  0x10   :  { %333 = vmatmul.mubr.msk.bf16.vlgmr.msra.gmra.mxu0 %vm87_vm1, %v26_v20  ;;  %335 = vmatmul.mubr.msk.bf16.vlgmr.msra.gmra.mxu1 %vm87_vm1, %v26_v20 }
  0x11   :  { %345 = vmatpush3.bf16.msra.mxu0 %v256_v22  ;;  %350 = vmatprep.mubr.msk.bf16.mxu0 %vm385_vm2, %v383_v21 }
  0x12   :  { %346 = vmatprep.subr.bf16.mxu0 %v383_v21 }
  0x15   :  { %347 = vmatpush3.bf16.msra.mxu0 %v380_v24 }
  0x16   :  { %348 = vmatprep.subr.bf16.mxu0 %v383_v21 }
  0x19   :  { %349 = vmatpush3.bf16.msra.mxu0 %v381_v25 }
  0x1c   :  { %351 = vmatmul.mubr.msk.bf16.vlgmr.msra.gmra.mxu0 %vm87_vm1, %v231_v26 }
  0x82   :  { %v190_v27 = vpop.permute.xlu0 %189  ;;  %v302_v50 = vpop.permute.xlu1 %301 }
  0x87   :  { %v198_v31 = vpop.permute.xlu0 %197  ;;  %v307_v61 = vpop.permute.xlu1 %306 }
  0xd0   :  { %v138_v32 = vpop.f32.mrf.mxu0  ;;  %v179_v33 = vpop.f32.mrf.mxu1 }
  0xd1   :  { %v192_v34 = vmul.f32 %v190_v27, %v138_v32  ;;  %v194_v35 = vmul.f32 %v190_v27, %v179_v33 }
  0xd2   :  { %v140_v36 = vpop.f32.mrf.mxu0  ;;  %v181_v37 = vpop.f32.mrf.mxu1 }
  0xd3   :  { %v193_v40 = vmul.f32 %v190_v27, %v140_v36  ;;  %v195_v41 = vmul.f32 %v190_v27, %v181_v37  ;;  %v200_v42 = vadd.f32 %v198_v31, %v192_v34  ;;  %v202_v43 = vadd.f32 %v198_v31, %v194_v35 }
  0xd4   :  { %v142_v44 = vpop.f32.mrf.mxu0  ;;  %v183_v45 = vpop.f32.mrf.mxu1 }
  0xd5   :  { %v201_v46 = vadd.f32 %v198_v31, %v193_v40  ;;  %v203_v47 = vadd.f32 %v198_v31, %v195_v41  ;;  %v204_v48 = vmax.f32 %v200_v42, 0.0  ;;  %v206_v49 = vmax.f32 %v202_v43, 0.0 }
  0xd6   :  { %v143_v51 = vpop.f32.mrf.mxu0  ;;  %v184_v52 = vpop.f32.mrf.mxu1 }
  0xd7   :  { %v205_v54 = vmax.f32 %v201_v46, 0.0  ;;  %v207_v55 = vmax.f32 %v203_v47, 0.0 }
  0xd9   :  { %v212_v56 = vcombine.low %v204_v48, %v205_v54  ;;  %v213_v57 = vcombine.low %v206_v49, %v207_v55 }
  0xdb   :  { %v220_v58 = vrot.slane %v212_v56, %v219_v53  ;;  %v227_v59 = vrot.slane %v213_v57, %v219_v53 }
  0xdc   :  { %v292_v60 = vpop.f32.mrf.mxu0 }
  0xdd   :  { %v228_v62 = vcombine.low %v220_v58, %v227_v59  ;;  %v304_v63 = vmul.f32 %v302_v50, %v292_v60 }
  0xde   :  { %v352_v0 = vpop.f32.mrf.mxu0 }
  0xdf   :  { %230 = vst [vmem:[%s498_s6] sm:$0xff] %v228_v62  ;;  %v309_v1 = vadd.f32 %v307_v61, %v304_v63 }
  0xe0   :  { %v295_v2 = vpop.f32.mrf.mxu0 }
  0xe1   :  { %v310_v3 = vmax.f32 %v309_v1, 0.0 }
  0xe2   :  { %v353_v4 = vpop.f32.mrf.mxu0 }
  0xe3   :  { %311 = vst [vmem:[%s499_s7] sm:$0x3] %v310_v3 }

// kernel: bottleneck_forward.5
= control target key start
LH: loop header
LB: loop body
LE: loop exit
PB: predicated region body
PF: predicated region fallthrough
CT: control target
= control target key end

     0   :  { %v39_v0 = vlaneseq  ;;  %v279_v2 = vmov 1983009808   ;;  %v280_v4 = vmov 0   ;;  %v281_v9 = vmov 1   ;;  %s387_s0 = inlined_call_operand.vmem [shape: bf16[4,512], index: 0, kind: input, shape index: {}]   ;;  %s388_s2 = inlined_call_operand.vmem [shape: f32[8,2], index: 2, kind: input, shape index: {}]   ;;  %s389_s6 = inlined_call_operand.vmem [shape: f32[8,2], index: 6, kind: input, shape index: {}]   ;;  %s390_s4 = inlined_call_operand.vmem [shape: bf16[4,128], index: 4, kind: input, shape index: {}]   ;;  %s391_s1 = inlined_call_operand.vmem [shape: bf16[8,4], index: 1, kind: input, shape index: {}]   ;;  %s392_s5 = inlined_call_operand.vmem [shape: bf16[8,4], index: 5, kind: input, shape index: {}]   ;;  %s393_s3 = inlined_call_operand.vmem [shape: f32[8,512], index: 3, kind: input, shape index: {}]   ;;  %s394_s8 = inlined_call_operand.vmem [shape: f32[8,512], index: 8, kind: output, shape index: {0}]   ;;  %s395_s7 = inlined_call_operand.vmem [shape: f32[8,128], index: 7, kind: input, shape index: {}]   ;;  %s396_s9 = inlined_call_operand.vmem [shape: f32[8,128], index: 9, kind: output, shape index: {1}]  }
   0x1   :  { %v33_v1 = vld [vmem:[%s387_s0] sm:$0xff]  ;;  %v37_v3 = vunpack.c.l.s4 %v279_v2  ;;  %101 = vmatprep.mubr.bf16.mxu0 %v280_v4  ;;  %142 = vmatprep.mubr.bf16.mxu1 %v280_v4  ;;  %vm56_vm0 = vcmask 1041408   ;;  %vm52_vm1 = vcmask 31744   ;;  %v282_v20 = vmov 0.0   ;;  %v171_v31 = vld [vmem:[%s393_s3 + $0x10] sm:$0xff]  ;;  %v170_v37 = vld [vmem:[%s393_s3 + $0x8] sm:$0xff] }
   0x2   :  { %v40_v5 = vshrl.u32 %v39_v0, 7  ;;  %275 = vset.pattern.permute.xlu0 %v280_v4  ;;  %v151_v6 = vld [vmem:[%s388_s2] sm:$0xff]  ;;  %v35_v8 = vcombine.high %v33_v1, %v33_v1  ;;  %276 = vset.pattern.permute.xlu1 %v281_v9  ;;  %vm283_vm2 = vmmov 0   ;;  %v172_v38 = vld [vmem:[%s393_s3 + $0x18] sm:$0xff] }
   0x3   :  { %v38_v7 = vunpack.c.0.s8 %v37_v3  ;;  %154 = vperm.xlu0 %275, %v151_v6   ;;  %v233_v10 = vld [vmem:[%s389_s6] sm:$0xff]  ;;  %162 = vperm.xlu1 %276, %v151_v6  }
   0x4   :  { %v186_v18 = vld [vmem:[%s390_s4] sm:$0x3] }
   0x5   :  { %v41_v11 = vsub.s32 %v38_v7, %v40_v5  ;;  %v32_v19 = vld [vmem:[%s391_s1] sm:$0xf]  ;;  %v191_v21 = vsel %vm56_vm0, %v186_v18, 0 }
   0x6   :  { %v185_v22 = vld [vmem:[%s392_s5] sm:$0xf] }
   0x7   :  { %v42_v12 = vrot.slane %v33_v1, %v41_v11  ;;  %v49_v13 = vrot.slane %v35_v8, %v41_v11  ;;  %236 = vperm.xlu0 %275, %v233_v10   ;;  %241 = vperm.xlu1 %276, %v233_v10   ;;  %v169_v30 = vld [vmem:[%s393_s3] sm:$0xff] }
   0x8   :  { %v245_v57 = vld [vmem:[%s395_s7] sm:$0xff] }
   0x9   :  { %v50_v14 = vcombine.high %v42_v12, %v42_v12  ;;  %v58_v15 = vsel %vm56_vm0, %v42_v12, 0  ;;  %v51_v16 = vcombine.high %v49_v13, %v49_v13  ;;  %v64_v17 = vsel %vm56_vm0, %v49_v13, 0 }
   0xb   :  { %257 = vmatprep.subr.msk.bf16.mxu0 %vm56_vm0, %v50_v14  ;;  %259 = vmatprep.subr.msk.bf16.mxu1 %vm56_vm0, %v51_v16 }
   0xc   :  { %84 = vmatpush1.bf16.msra.mxu0 %v58_v15  ;;  %125 = vmatpush1.bf16.msra.mxu1 %v64_v17 }
   0xd   :  { %264 = vmatprep.subr.bf16.mxu0 %v282_v20  ;;  %277 = vset.pattern.permute.xlu0 %v281_v9 }
   0xf   :  { %258 = vmatmul.mubr.msk.bf16.vlgmr.msra.gmra.mxu0 %vm52_vm1, %v32_v19  ;;  %260 = vmatmul.mubr.msk.bf16.vlgmr.msra.gmra.mxu1 %vm52_vm1, %v32_v19 }
  0x10   :  { %265 = vmatpush3.bf16.msra.mxu0 %v191_v21  ;;  %266 = vmatprep.mubr.msk.bf16.mxu0 %vm283_vm2, %v282_v20 }
  0x17   :  { %267 = vmatmul.mubr.msk.bf16.vlgmr.msra.gmra.mxu0 %vm52_vm1, %v185_v22 }
  0x7e   :  { %v155_v23 = vpop.permute.xlu0 %154  ;;  %v163_v24 = vpop.permute.xlu1 %162 }
  0x82   :  { %v237_v51 = vpop.permute.xlu0 %236  ;;  %v242_v56 = vpop.permute.xlu1 %241 }
  0xcf   :  { %v103_v25 = vpop.f32.mrf.mxu0  ;;  %v144_v26 = vpop.f32.mrf.mxu1 }
  0xd0   :  { %v157_v27 = vmul.f32 %v155_v23, %v103_v25  ;;  %v159_v28 = vmul.f32 %v155_v23, %v144_v26 }
  0xd1   :  { %v105_v29 = vpop.f32.mrf.mxu0  ;;  %v146_v32 = vpop.f32.mrf.mxu1 }
  0xd2   :  { %v158_v33 = vmul.f32 %v155_v23, %v105_v29  ;;  %v165_v34 = vadd.f32 %v163_v24, %v157_v27  ;;  %v167_v35 = vadd.f32 %v163_v24, %v159_v28  ;;  %v160_v36 = vmul.f32 %v155_v23, %v146_v32 }
  0xd3   :  { %v107_v39 = vpop.f32.mrf.mxu0  ;;  %v148_v40 = vpop.f32.mrf.mxu1 }
  0xd4   :  { %v166_v41 = vadd.f32 %v163_v24, %v158_v33  ;;  %v173_v42 = vadd.f32 %v169_v30, %v165_v34  ;;  %v175_v43 = vadd.f32 %v171_v31, %v167_v35  ;;  %v168_v44 = vadd.f32 %v163_v24, %v160_v36 }
  0xd5   :  { %v108_v45 = vpop.f32.mrf.mxu0  ;;  %v149_v46 = vpop.f32.mrf.mxu1 }
  0xd6   :  { %v174_v47 = vadd.f32 %v170_v37, %v166_v41  ;;  %v177_v48 = vmax.f32 %v173_v42, 0.0  ;;  %v179_v49 = vmax.f32 %v175_v43, 0.0  ;;  %v176_v50 = vadd.f32 %v172_v38, %v168_v44 }
  0xd7   :  { %v227_v52 = vpop.f32.mrf.mxu0 }
  0xd8   :  { %v178_v53 = vmax.f32 %v174_v47, 0.0  ;;  %181 = vst [vmem:[%s394_s8] sm:$0xff] %v177_v48  ;;  %183 = vst [vmem:[%s394_s8 + $0x10] sm:$0xff] %v179_v49  ;;  %v180_v54 = vmax.f32 %v176_v50, 0.0  ;;  %v239_v55 = vmul.f32 %v237_v51, %v227_v52 }
  0xd9   :  { %v268_v58 = vpop.f32.mrf.mxu0 }
  0xda   :  { %182 = vst [vmem:[%s394_s8 + $0x8] sm:$0xff] %v178_v53  ;;  %184 = vst [vmem:[%s394_s8 + $0x18] sm:$0xff] %v180_v54  ;;  %v244_v59 = vadd.f32 %v242_v56, %v239_v55 }
  0xdb   :  { %v230_v60 = vpop.f32.mrf.mxu0 }
  0xdc   :  { %v246_v61 = vadd.f32 %v245_v57, %v244_v59 }
  0xdd   :  { %v269_v62 = vpop.f32.mrf.mxu0 }
  0xde   :  { %v247_v63 = vmax.f32 %v246_v61, 0.0 }
  0xe0   :  { %248 = vst [vmem:[%s396_s9] sm:$0xff] %v247_v63 }

</bundles_post_ra>
